<compile_context>
chip_gen: v7x
topology: tpu7x:2x2x1
jax: 0.10.0
libtpu: 0.0.40
codegen_flags: <defaults>
</compile_context>

<pallas_src>
import functools

import jax
import jax.numpy as jnp
from jax.experimental import pallas as pl
from jax.experimental.pallas import tpu as pltpu


# ------------------------------ config helpers -----------------------------

@functools.lru_cache(maxsize=None)
def _vmem_limit_bytes():
    # ~7/8 of physical VMEM: ~112 MiB on v5e/v6e (128 MiB), ~56 MiB on v7x (64 MiB).
    try:
        info = pltpu.get_tpu_info()
        cap = int(getattr(info, "vmem_capacity_bytes", 64 * 1024 * 1024))
    except Exception:
        cap = 64 * 1024 * 1024
    return min(int(cap * 7 // 8), 112 * 1024 * 1024)


def _round_up(n, m):
    return (n + m - 1) // m * m


def _pick_batch_block(B, T, target_rows=256, max_rows=2048):
    """Batch elements per grid step: fill the 256x256 MXU (Bb*T >= 256) while
    keeping >= 2 parallel grid steps when possible (v7x megacore)."""
    best = None
    for bb in range(B, 0, -1):
        if B % bb:
            continue
        if target_rows <= bb * T <= max_rows:
            best = bb  # ends as the SMALLEST divisor meeting the target
    if best is not None:
        return best
    if B % 2 == 0 and B >= 2 and (B // 2) * T <= max_rows:
        return B // 2
    return 1 if B * T > max_rows else B


# ------------------------------ kernel helpers ------------------------------

def _layer_norm(x, gamma, beta, eps=1e-5):
    # PyTorch nn.LayerNorm: biased variance, eps inside sqrt, affine params.
    mu = jnp.mean(x, axis=-1, keepdims=True)
    var = jnp.mean((x - mu) ** 2, axis=-1, keepdims=True)
    return (x - mu) * jax.lax.rsqrt(var + eps) * gamma + beta


# ------------------------------ Pallas kernels ------------------------------

def fused_blocks_kernel(
    n_heads,
    x_ref,                       # (Bb, T, C) f32  embeddings (read at l == 0)
    ln1_g_ref, ln1_b_ref,        # (1, C)  f32   (layer l slice, leading L squeezed)
    wqkv_ref,                    # (C, 3C) bf16  fused [Q | K | V]
    wp_ref, bp_ref,              # (C, C)  bf16, (1, C) f32
    ln2_g_ref, ln2_b_ref,        # (1, C)  f32
    w1_ref, b1_ref,              # (C, 4C) bf16, (1, 4C) f32
    w2_ref, b2_ref,              # (4C, C) bf16, (1, C) f32
    o_ref,                       # (Bb, T, C) f32  (written at l == L-1)
    x_sc,                        # (Bb, T, C) f32  VMEM scratch carrying the activation
):
    """One layer of the block stack for one batch-block; x stays VMEM-resident."""
    l = pl.program_id(1)

    @pl.when(l == 0)
    def _():
        x_sc[...] = x_ref[...]

    Bb, T, C = x_sc.shape
    H = n_heads
    hs = C // H
    M = Bb * T

    x = x_sc[...].reshape(M, C)

    # ---- self-attention branch ----
    xn = _layer_norm(x, ln1_g_ref[...], ln1_b_ref[...])
    qkv = jnp.dot(xn.astype(jnp.bfloat16), wqkv_ref[...],
                  preferred_element_type=jnp.float32)            # (M, 3C) f32

    # NOTE: reference scales by n_embd**-0.5 (not head_size**-0.5); fold into q.
    q = qkv[:, 0 * C:1 * C] * (C ** -0.5)
    k = qkv[:, 1 * C:2 * C]
    v = qkv[:, 2 * C:3 * C]

    row = jax.lax.broadcasted_iota(jnp.int32, (T, T), 0)
    col = jax.lax.broadcasted_iota(jnp.int32, (T, T), 1)
    causal = (row >= col)[None, :, :]

    # Head-batched attention per batch element (static unroll over Bb); the
    # big projection/FFN matmuls above/below stay batched over all M rows.
    # TODO(synk): replace the (T,H,hs)->(H,T,hs) relayouts with pltpu.einshape
    # and switch to a flash-style KV-tile loop with causal tile skipping once
    # T grows beyond a few hundred (the (H,T,T) scores are O(T^2) VMEM).
    attn_parts = []
    for bi in range(Bb):
        sl = slice(bi * T, (bi + 1) * T)
        qh = q[sl].reshape(T, H, hs).transpose(1, 0, 2).astype(jnp.bfloat16)
        kh = k[sl].reshape(T, H, hs).transpose(1, 0, 2).astype(jnp.bfloat16)
        vh = v[sl].reshape(T, H, hs).transpose(1, 0, 2).astype(jnp.bfloat16)

        s = jnp.einsum("hqd,hkd->hqk", qh, kh,
                       preferred_element_type=jnp.float32)       # (H, T, T) f32
        s = jnp.where(causal, s, -1e30)                          # causal mask
        s = s - jnp.max(s, axis=-1, keepdims=True)
        p = jnp.exp(s)
        p = p * pl.reciprocal(jnp.sum(p, axis=-1, keepdims=True), approx=True)

        a = jnp.einsum("hqk,hkd->hqd", p.astype(jnp.bfloat16), vh,
                       preferred_element_type=jnp.float32)       # (H, T, hs)
        attn_parts.append(a.transpose(1, 0, 2).reshape(T, C))
    attn = attn_parts[0] if Bb == 1 else jnp.concatenate(attn_parts, axis=0)

    proj = jnp.dot(attn.astype(jnp.bfloat16), wp_ref[...],
                   preferred_element_type=jnp.float32) + bp_ref[...]
    x = x + proj                                                 # dropout = identity (eval)

    # ---- feed-forward branch ----
    xn2 = _layer_norm(x, ln2_g_ref[...], ln2_b_ref[...])
    h1 = jnp.dot(xn2.astype(jnp.bfloat16), w1_ref[...],
                 preferred_element_type=jnp.float32) + b1_ref[...]
    h1 = jnp.maximum(h1, 0.0)                                    # ReLU
    ff = jnp.dot(h1.astype(jnp.bfloat16), w2_ref[...],
                 preferred_element_type=jnp.float32) + b2_ref[...]
    x = x + ff                                                   # dropout = identity (eval)

    x_sc[...] = x.reshape(Bb, T, C)

    @pl.when(l == pl.num_programs(1) - 1)
    def _():
        o_ref[...] = x_sc[...]


def lm_head_kernel(x_ref, w_ref, b_ref, o_ref):
    # x: (tm, C) f32, w: (C, tn) bf16, b: (1, tn) f32, o: (tm, tn) f32
    o_ref[...] = jnp.dot(x_ref[...].astype(jnp.bfloat16), w_ref[...],
                         preferred_element_type=jnp.float32) + b_ref[...]


# --------------------------------- wrappers --------------------------------

def run_blocks(x, bw, n_heads):
    """Run all L transformer blocks in a single fused pallas_call."""
    B, T, C = x.shape
    L = bw["wqkv"].shape[0]
    Bb = _pick_batch_block(B, T)
    G = B // Bb

    act_spec = pl.BlockSpec((Bb, T, C), lambda g, l: (g, 0, 0))

    def wspec(arr):
        # Layer-streamed weight: block index follows the layer grid axis, so the
        # BlockSpec pipeline double-buffers and prefetches layer l+1 while layer
        # l computes.
        assert arr.ndim == 3
        return pl.BlockSpec((None, arr.shape[1], arr.shape[2]), lambda g, l: (l, 0, 0))

    weight_args = (
        bw["ln1_g"], bw["ln1_b"],
        bw["wqkv"],
        bw["wp"], bw["bp"],
        bw["ln2_g"], bw["ln2_b"],
        bw["w1"], bw["b1"],
        bw["w2"], bw["b2"],
    )
    in_specs = [act_spec] + [wspec(a) for a in weight_args]

    flops = int(2 * B * T * C * (12 * C + 2 * T) * L)
    transcend = int(B * L * (n_heads * T * T + n_heads * T + 2 * T))
    bytes_acc = int(2 * B * T * C * 4 + G * L * (12 * C * C * 2 + 16 * C * 4))

    return pl.pallas_call(
        functools.partial(fused_blocks_kernel, n_heads),
        out_shape=jax.ShapeDtypeStruct(x.shape, x.dtype),
        grid=(G, L),
        in_specs=in_specs,
        out_specs=act_spec,
        scratch_shapes=[pltpu.VMEM((Bb, T, C), jnp.float32)],
        compiler_params=pltpu.CompilerParams(
            dimension_semantics=("parallel", "arbitrary"),
            vmem_limit_bytes=_vmem_limit_bytes()),
        cost_estimate=pl.CostEstimate(
            flops=flops, transcendentals=transcend, bytes_accessed=bytes_acc),
    )(x, *weight_args)


def run_lm_head(x, w, b):
    B, T, C = x.shape
    V = w.shape[1]
    M = B * T
    xf = x.reshape(M, C)

    # Pad vocab to a multiple of 128 -> lane-dense unmasked stores.  Pad bias
    # with a large negative so padded logits stay inert under any softmax.
    Vp = _round_up(V, 128)
    if Vp != V:
        w = jnp.pad(w, ((0, 0), (0, Vp - V)))
        b = jnp.pad(b, ((0, 0), (0, Vp - V)), constant_values=-1e30)

    # Row tile: prefer big tiles; pad M up to the tile (no giant-fallback tile).
    if M >= 1024:
        tm = 512
    elif M >= 256:
        tm = 256
    else:
        tm = _round_up(M, 8)
    Mp = _round_up(M, tm)
    if Mp != M:
        xf = jnp.pad(xf, ((0, Mp - M), (0, 0)))

    tn = next(c for c in (2048, 1024, 512, 256, 128) if Vp % c == 0)
    grid = (Mp // tm, Vp // tn)

    out = pl.pallas_call(
        lm_head_kernel,
        out_shape=jax.ShapeDtypeStruct((Mp, Vp), jnp.float32),
        grid=grid,
        in_specs=[
            pl.BlockSpec((tm, C), lambda i, j: (i, 0)),
            pl.BlockSpec((C, tn), lambda i, j: (0, j)),
            pl.BlockSpec((1, tn), lambda i, j: (0, j)),
        ],
        out_specs=pl.BlockSpec((tm, tn), lambda i, j: (i, j)),
        compiler_params=pltpu.CompilerParams(
            dimension_semantics=("parallel", "parallel"),
            vmem_limit_bytes=_vmem_limit_bytes()),
        cost_estimate=pl.CostEstimate(
            flops=int(2 * Mp * C * Vp), transcendentals=0,
            bytes_accessed=int(Mp * C * 4 + C * Vp * 2 + Mp * Vp * 4 + Vp * 4)),
    )(xf, w, b)
    # API-boundary slice back to the logical (B, T, V) shape.
    return out[:M, :V].reshape(B, T, V)


def tlm_forward(params, idx, targets=None):
    """Mirrors TLM.forward.  idx: (B, T) int32."""
    B, T = idx.shape
    tok_emb = params["tok_emb"][idx]          # (B, T, C) -- gather kept in JAX glue
    pos_emb = params["pos_emb"][:T]           # (T, C)
    x = (tok_emb + pos_emb).astype(jnp.float32)
    x = run_blocks(x, params["blocks"], params["n_heads"])
    logits = run_lm_head(x, params["lm_w"], params["lm_b"])
    if targets is None:
        return logits, None
    # cross-entropy kept in plain JAX glue (not the hot path)
    flat = logits.reshape(B * T, -1)
    logp = jax.nn.log_softmax(flat, axis=-1)
    loss = -jnp.mean(jnp.take_along_axis(logp, targets.reshape(-1, 1), axis=-1))
    return logits, loss


# -------------------------------- param init --------------------------------

def init_params(key, block_size, n_embd, vocab_size, n_blocks, n_heads):
    C, L = n_embd, n_blocks
    keys = jax.random.split(key, 8)

    def w(k, shape, scale=0.02, dtype=jnp.bfloat16):
        return (scale * jax.random.normal(k, shape)).astype(dtype)

    # Per-block weights stacked along a leading layer axis L for the fused call.
    params = {
        "n_heads": n_heads,
        "tok_emb": w(keys[0], (vocab_size, C), dtype=jnp.float32),
        "pos_emb": w(keys[1], (block_size, C), dtype=jnp.float32),
        "lm_w": w(keys[2], (C, vocab_size)),              # bf16, (in, out)
        "lm_b": jnp.zeros((1, vocab_size), jnp.float32),
        "blocks": {
            "ln1_g": jnp.ones((L, 1, C), jnp.float32),
            "ln1_b": jnp.zeros((L, 1, C), jnp.float32),
            # fused [Q | K | V] projection; per-head columns packed inside each slab
            "wqkv": w(keys[3], (L, C, 3 * C)),
            "wp":   w(keys[4], (L, C, C)),
            "bp":   jnp.zeros((L, 1, C), jnp.float32),
            "ln2_g": jnp.ones((L, 1, C), jnp.float32),
            "ln2_b": jnp.zeros((L, 1, C), jnp.float32),
            "w1":   w(keys[5], (L, C, 4 * C)),
            "b1":   jnp.zeros((L, 1, 4 * C), jnp.float32),
            "w2":   w(keys[6], (L, 4 * C, C)),
            "b2":   jnp.zeros((L, 1, C), jnp.float32),
        },
    }
    return params


# ----------------------------------- main -----------------------------------

if __name__ == "__main__":
    block_size, n_embd, vocab_size, n_blocks, n_heads = 8, 32, 64, 2, 4
    B, T = 2, 8

    root = jax.random.PRNGKey(0)
    pkey, ikey = jax.random.split(root)
    params = init_params(pkey, block_size, n_embd, vocab_size, n_blocks, n_heads)
    idx = jax.random.randint(ikey, (B, T), 0, vocab_size, dtype=jnp.int32)

    logits, loss = tlm_forward(params, idx, targets=None)
    jax.block_until_ready(logits)
    assert logits.shape == (B, T, vocab_size)
    assert loss is None
    print("KERNEL_OK")
</pallas_src>

<mosaic_0001>
module attributes {stable_mosaic.version = 11 : i64} {
  func.func @fused_blocks_kernel(%arg0: i32, %arg1: i32, %arg2: memref<1x8x32xf32, #tpu.memory_space<vmem>>, %arg3: memref<1x1x32xf32, #tpu.memory_space<vmem>>, %arg4: memref<1x1x32xf32, #tpu.memory_space<vmem>>, %arg5: memref<1x32x96xbf16, #tpu.memory_space<vmem>>, %arg6: memref<1x32x32xbf16, #tpu.memory_space<vmem>>, %arg7: memref<1x1x32xf32, #tpu.memory_space<vmem>>, %arg8: memref<1x1x32xf32, #tpu.memory_space<vmem>>, %arg9: memref<1x1x32xf32, #tpu.memory_space<vmem>>, %arg10: memref<1x32x128xbf16, #tpu.memory_space<vmem>>, %arg11: memref<1x1x128xf32, #tpu.memory_space<vmem>>, %arg12: memref<1x128x32xbf16, #tpu.memory_space<vmem>>, %arg13: memref<1x1x32xf32, #tpu.memory_space<vmem>>, %arg14: memref<1x8x32xf32, #tpu.memory_space<vmem>>, %arg15: memref<1x8x32xf32, #tpu.memory_space<vmem>>) attributes {dimension_semantics = [#tpu.dimension_semantics<parallel>, #tpu.dimension_semantics<arbitrary>], iteration_bounds = array<i64: 2, 2>, scalar_prefetch = 0 : i64, scratch_operands = 1 : i64, tpu.core_type = #tpu.core_type<tc>, window_params = [{transform_indices = @transform_0, window_bounds = array<i64: 1, 8, 32>}, {transform_indices = @transform_1, window_bounds = array<i64: 1, 1, 32>}, {transform_indices = @transform_2, window_bounds = array<i64: 1, 1, 32>}, {transform_indices = @transform_3, window_bounds = array<i64: 1, 32, 96>}, {transform_indices = @transform_4, window_bounds = array<i64: 1, 32, 32>}, {transform_indices = @transform_5, window_bounds = array<i64: 1, 1, 32>}, {transform_indices = @transform_6, window_bounds = array<i64: 1, 1, 32>}, {transform_indices = @transform_7, window_bounds = array<i64: 1, 1, 32>}, {transform_indices = @transform_8, window_bounds = array<i64: 1, 32, 128>}, {transform_indices = @transform_9, window_bounds = array<i64: 1, 1, 128>}, {transform_indices = @transform_10, window_bounds = array<i64: 1, 128, 32>}, {transform_indices = @transform_11, window_bounds = array<i64: 1, 1, 32>}, {transform_indices = @transform_12, window_bounds = array<i64: 1, 8, 32>}]} {
    %c0_i32 = arith.constant 0 : i32
    %0 = arith.cmpi eq, %arg1, %c0_i32 : i32
    %1 = arith.extui %0 : i1 to i32
    %c0_i32_0 = arith.constant 0 : i32
    %2 = arith.cmpi ne, %1, %c0_i32_0 : i32
    scf.if %2 {
      %c0_60 = arith.constant 0 : index
      %c0_61 = arith.constant 0 : index
      %c0_62 = arith.constant 0 : index
      %131 = vector.load %arg2[%c0_60, %c0_61, %c0_62] : memref<1x8x32xf32, #tpu.memory_space<vmem>>, vector<1x8x32xf32>
      %c0_63 = arith.constant 0 : index
      %c0_64 = arith.constant 0 : index
      %c0_65 = arith.constant 0 : index
      %132 = vector.load %arg15[%c0_63, %c0_64, %c0_65] : memref<1x8x32xf32, #tpu.memory_space<vmem>>, vector<1x8x32xf32>
      tpu.vector_store %arg15[%c0_63, %c0_64, %c0_65], %131 {strides = array<i32>} : memref<1x8x32xf32, #tpu.memory_space<vmem>>, vector<1x8x32xf32>,
    } else {
    }
    %c0 = arith.constant 0 : index
    %c0_1 = arith.constant 0 : index
    %c0_2 = arith.constant 0 : index
    %3 = vector.load %arg15[%c0, %c0_1, %c0_2] : memref<1x8x32xf32, #tpu.memory_space<vmem>>, vector<1x8x32xf32>
    %4 = vector.shape_cast %3 : vector<1x8x32xf32> to vector<8x32xf32>
    %c0_3 = arith.constant 0 : index
    %c0_4 = arith.constant 0 : index
    %c0_5 = arith.constant 0 : index
    %5 = vector.load %arg3[%c0_3, %c0_4, %c0_5] : memref<1x1x32xf32, #tpu.memory_space<vmem>>, vector<1x1x32xf32>
    %6 = vector.shape_cast %5 : vector<1x1x32xf32> to vector<1x32xf32>
    %c0_6 = arith.constant 0 : index
    %c0_7 = arith.constant 0 : index
    %c0_8 = arith.constant 0 : index
    %7 = vector.load %arg4[%c0_6, %c0_7, %c0_8] : memref<1x1x32xf32, #tpu.memory_space<vmem>>, vector<1x1x32xf32>
    %8 = vector.shape_cast %7 : vector<1x1x32xf32> to vector<1x32xf32>
    %cst = arith.constant dense<0.000000e+00> : vector<8xf32>
    %9 = vector.multi_reduction <add>, %4, %cst [1] : vector<8x32xf32> to vector<8xf32>
    %10 = vector.shape_cast %9 : vector<8xf32> to vector<8x1xf32>
    %cst_9 = arith.constant 3.200000e+01 : f32
    %11 = vector.broadcast %cst_9 : f32 to vector<8x1xf32>
    %12 = arith.divf %10, %11 : vector<8x1xf32>
    %13 = vector.broadcast %12 : vector<8x1xf32> to vector<8x32xf32>
    %14 = arith.subf %4, %13 : vector<8x32xf32>
    %15 = arith.mulf %14, %14 : vector<8x32xf32>
    %cst_10 = arith.constant dense<0.000000e+00> : vector<8xf32>
    %16 = vector.multi_reduction <add>, %15, %cst_10 [1] : vector<8x32xf32> to vector<8xf32>
    %17 = vector.shape_cast %16 : vector<8xf32> to vector<8x1xf32>
    %cst_11 = arith.constant 3.200000e+01 : f32
    %18 = vector.broadcast %cst_11 : f32 to vector<8x1xf32>
    %19 = arith.divf %17, %18 : vector<8x1xf32>
    %20 = vector.broadcast %12 : vector<8x1xf32> to vector<8x32xf32>
    %21 = arith.subf %4, %20 : vector<8x32xf32>
    %cst_12 = arith.constant 9.99999974E-6 : f32
    %22 = vector.broadcast %cst_12 : f32 to vector<8x1xf32>
    %23 = arith.addf %19, %22 : vector<8x1xf32>
    %24 = math.rsqrt %23 : vector<8x1xf32>
    %25 = vector.broadcast %24 : vector<8x1xf32> to vector<8x32xf32>
    %26 = arith.mulf %21, %25 : vector<8x32xf32>
    %27 = vector.broadcast %6 : vector<1x32xf32> to vector<8x32xf32>
    %28 = arith.mulf %26, %27 : vector<8x32xf32>
    %29 = vector.broadcast %8 : vector<1x32xf32> to vector<8x32xf32>
    %30 = arith.addf %28, %29 : vector<8x32xf32>
    %31 = arith.truncf %30 : vector<8x32xf32> to vector<8x32xbf16>
    %c0_13 = arith.constant 0 : index
    %c0_14 = arith.constant 0 : index
    %c0_15 = arith.constant 0 : index
    %32 = vector.load %arg5[%c0_13, %c0_14, %c0_15] : memref<1x32x96xbf16, #tpu.memory_space<vmem>>, vector<1x32x96xbf16>
    %33 = vector.shape_cast %32 : vector<1x32x96xbf16> to vector<32x96xbf16>
    %cst_16 = arith.constant dense<0.000000e+00> : vector<8x96xf32>
    %34 = tpu.matmul %31, %33, %cst_16 {dimension_numbers = #tpu.dot_dimension_numbers<[1], [0], [0], [1], [0, 0, 1, 1], [], []>} : vector<8x32xbf16>, vector<32x96xbf16>, vector<8x96xf32> -> vector<8x96xf32>
    %35 = vector.extract_strided_slice %34 {offsets = [0, 0], sizes = [8, 32], strides = [1, 1]} : vector<8x96xf32> to vector<8x32xf32>
    %cst_17 = arith.constant 0.176776692 : f32
    %36 = vector.broadcast %cst_17 : f32 to vector<8x32xf32>
    %37 = arith.mulf %35, %36 : vector<8x32xf32>
    %38 = vector.extract_strided_slice %34 {offsets = [0, 32], sizes = [8, 32], strides = [1, 1]} : vector<8x96xf32> to vector<8x32xf32>
    %39 = vector.extract_strided_slice %34 {offsets = [0, 64], sizes = [8, 32], strides = [1, 1]} : vector<8x96xf32> to vector<8x32xf32>
    %40 = tpu.iota {dimensions = array<i32: 0>} : vector<8x8xi32>
    %41 = tpu.iota {dimensions = array<i32: 1>} : vector<8x8xi32>
    %42 = arith.cmpi sge, %40, %41 : vector<8x8xi32>
    %43 = vector.shape_cast %42 : vector<8x8xi1> to vector<1x8x8xi1>
    %44 = vector.shape_cast %37 : vector<8x32xf32> to vector<8x4x8xf32>
    %45 = tpu.transpose %44, [1, 0, 2] : vector<8x4x8xf32> -> vector<4x8x8xf32>
    %46 = arith.truncf %45 : vector<4x8x8xf32> to vector<4x8x8xbf16>
    %47 = vector.shape_cast %38 : vector<8x32xf32> to vector<8x4x8xf32>
    %48 = tpu.transpose %47, [1, 0, 2] : vector<8x4x8xf32> -> vector<4x8x8xf32>
    %49 = arith.truncf %48 : vector<4x8x8xf32> to vector<4x8x8xbf16>
    %50 = vector.shape_cast %39 : vector<8x32xf32> to vector<8x4x8xf32>
    %51 = tpu.transpose %50, [1, 0, 2] : vector<8x4x8xf32> -> vector<4x8x8xf32>
    %52 = arith.truncf %51 : vector<4x8x8xf32> to vector<4x8x8xbf16>
    "tpu.trace_start"() <{level = 10 : i32, message = "hqd,hkd->hqk"}> : () -> ()
    %cst_18 = arith.constant dense<0.000000e+00> : vector<4x8x8xf32>
    %53 = tpu.matmul %46, %49, %cst_18 {dimension_numbers = #tpu.dot_dimension_numbers<[2], [2], [1], [1], [0, 0, 0, 1, 1, 1], [0], [0]>} : vector<4x8x8xbf16>, vector<4x8x8xbf16>, vector<4x8x8xf32> -> vector<4x8x8xf32>
    %cst_19 = arith.constant -1.000000e+30 : f32
    "tpu.trace_stop"() : () -> ()
    %54 = vector.shape_cast %43 : vector<1x8x8xi1> to vector<1x8x8xi1>
    %55 = vector.broadcast %54 : vector<1x8x8xi1> to vector<4x8x8xi1>
    %56 = vector.broadcast %cst_19 : f32 to vector<4x8x8xf32>
    %57 = arith.select %55, %53, %56 : vector<4x8x8xi1>, vector<4x8x8xf32>
    %cst_20 = arith.constant dense<0xFF800000> : vector<4x8xf32>
    %58 = vector.multi_reduction <maximumf>, %57, %cst_20 [2] : vector<4x8x8xf32> to vector<4x8xf32>
    %59 = vector.shape_cast %58 : vector<4x8xf32> to vector<4x8x1xf32>
    %60 = vector.broadcast %59 : vector<4x8x1xf32> to vector<4x8x8xf32>
    %61 = arith.subf %57, %60 : vector<4x8x8xf32>
    %62 = math.exp %61 : vector<4x8x8xf32>
    %cst_21 = arith.constant dense<0.000000e+00> : vector<4x8xf32>
    %63 = vector.multi_reduction <add>, %62, %cst_21 [2] : vector<4x8x8xf32> to vector<4x8xf32>
    %64 = vector.shape_cast %63 : vector<4x8xf32> to vector<4x8x1xf32>
    %65 = tpu.reciprocal %64 {approx = true} : vector<4x8x1xf32> -> vector<4x8x1xf32>
    %66 = vector.broadcast %65 : vector<4x8x1xf32> to vector<4x8x8xf32>
    %67 = arith.mulf %62, %66 : vector<4x8x8xf32>
    %68 = arith.truncf %67 : vector<4x8x8xf32> to vector<4x8x8xbf16>
    "tpu.trace_start"() <{level = 10 : i32, message = "hqk,hkd->hqd"}> : () -> ()
    %cst_22 = arith.constant dense<0.000000e+00> : vector<4x8x8xf32>
    %69 = tpu.matmul %68, %52, %cst_22 {dimension_numbers = #tpu.dot_dimension_numbers<[2], [1], [1], [2], [0, 0, 0, 1, 1, 2], [0], [0]>} : vector<4x8x8xbf16>, vector<4x8x8xbf16>, vector<4x8x8xf32> -> vector<4x8x8xf32>
    "tpu.trace_stop"() : () -> ()
    %70 = tpu.transpose %69, [1, 0, 2] : vector<4x8x8xf32> -> vector<8x4x8xf32>
    %71 = vector.shape_cast %70 : vector<8x4x8xf32> to vector<8x32xf32>
    %72 = arith.truncf %71 : vector<8x32xf32> to vector<8x32xbf16>
    %c0_23 = arith.constant 0 : index
    %c0_24 = arith.constant 0 : index
    %c0_25 = arith.constant 0 : index
    %73 = vector.load %arg6[%c0_23, %c0_24, %c0_25] : memref<1x32x32xbf16, #tpu.memory_space<vmem>>, vector<1x32x32xbf16>
    %74 = vector.shape_cast %73 : vector<1x32x32xbf16> to vector<32x32xbf16>
    %cst_26 = arith.constant dense<0.000000e+00> : vector<8x32xf32>
    %75 = tpu.matmul %72, %74, %cst_26 {dimension_numbers = #tpu.dot_dimension_numbers<[1], [0], [0], [1], [0, 0, 1, 1], [], []>} : vector<8x32xbf16>, vector<32x32xbf16>, vector<8x32xf32> -> vector<8x32xf32>
    %c0_27 = arith.constant 0 : index
    %c0_28 = arith.constant 0 : index
    %c0_29 = arith.constant 0 : index
    %76 = vector.load %arg7[%c0_27, %c0_28, %c0_29] : memref<1x1x32xf32, #tpu.memory_space<vmem>>, vector<1x1x32xf32>
    %77 = vector.shape_cast %76 : vector<1x1x32xf32> to vector<1x32xf32>
    %78 = vector.broadcast %77 : vector<1x32xf32> to vector<8x32xf32>
    %79 = arith.addf %75, %78 : vector<8x32xf32>
    %80 = arith.addf %4, %79 : vector<8x32xf32>
    %c0_30 = arith.constant 0 : index
    %c0_31 = arith.constant 0 : index
    %c0_32 = arith.constant 0 : index
    %81 = vector.load %arg8[%c0_30, %c0_31, %c0_32] : memref<1x1x32xf32, #tpu.memory_space<vmem>>, vector<1x1x32xf32>
    %82 = vector.shape_cast %81 : vector<1x1x32xf32> to vector<1x32xf32>
    %c0_33 = arith.constant 0 : index
    %c0_34 = arith.constant 0 : index
    %c0_35 = arith.constant 0 : index
    %83 = vector.load %arg9[%c0_33, %c0_34, %c0_35] : memref<1x1x32xf32, #tpu.memory_space<vmem>>, vector<1x1x32xf32>
    %84 = vector.shape_cast %83 : vector<1x1x32xf32> to vector<1x32xf32>
    %cst_36 = arith.constant dense<0.000000e+00> : vector<8xf32>
    %85 = vector.multi_reduction <add>, %80, %cst_36 [1] : vector<8x32xf32> to vector<8xf32>
    %86 = vector.shape_cast %85 : vector<8xf32> to vector<8x1xf32>
    %cst_37 = arith.constant 3.200000e+01 : f32
    %87 = vector.broadcast %cst_37 : f32 to vector<8x1xf32>
    %88 = arith.divf %86, %87 : vector<8x1xf32>
    %89 = vector.broadcast %88 : vector<8x1xf32> to vector<8x32xf32>
    %90 = arith.subf %80, %89 : vector<8x32xf32>
    %91 = arith.mulf %90, %90 : vector<8x32xf32>
    %cst_38 = arith.constant dense<0.000000e+00> : vector<8xf32>
    %92 = vector.multi_reduction <add>, %91, %cst_38 [1] : vector<8x32xf32> to vector<8xf32>
    %93 = vector.shape_cast %92 : vector<8xf32> to vector<8x1xf32>
    %cst_39 = arith.constant 3.200000e+01 : f32
    %94 = vector.broadcast %cst_39 : f32 to vector<8x1xf32>
    %95 = arith.divf %93, %94 : vector<8x1xf32>
    %96 = vector.broadcast %88 : vector<8x1xf32> to vector<8x32xf32>
    %97 = arith.subf %80, %96 : vector<8x32xf32>
    %cst_40 = arith.constant 9.99999974E-6 : f32
    %98 = vector.broadcast %cst_40 : f32 to vector<8x1xf32>
    %99 = arith.addf %95, %98 : vector<8x1xf32>
    %100 = math.rsqrt %99 : vector<8x1xf32>
    %101 = vector.broadcast %100 : vector<8x1xf32> to vector<8x32xf32>
    %102 = arith.mulf %97, %101 : vector<8x32xf32>
    %103 = vector.broadcast %82 : vector<1x32xf32> to vector<8x32xf32>
    %104 = arith.mulf %102, %103 : vector<8x32xf32>
    %105 = vector.broadcast %84 : vector<1x32xf32> to vector<8x32xf32>
    %106 = arith.addf %104, %105 : vector<8x32xf32>
    %107 = arith.truncf %106 : vector<8x32xf32> to vector<8x32xbf16>
    %c0_41 = arith.constant 0 : index
    %c0_42 = arith.constant 0 : index
    %c0_43 = arith.constant 0 : index
    %108 = vector.load %arg10[%c0_41, %c0_42, %c0_43] : memref<1x32x128xbf16, #tpu.memory_space<vmem>>, vector<1x32x128xbf16>
    %109 = vector.shape_cast %108 : vector<1x32x128xbf16> to vector<32x128xbf16>
    %cst_44 = arith.constant dense<0.000000e+00> : vector<8x128xf32>
    %110 = tpu.matmul %107, %109, %cst_44 {dimension_numbers = #tpu.dot_dimension_numbers<[1], [0], [0], [1], [0, 0, 1, 1], [], []>} : vector<8x32xbf16>, vector<32x128xbf16>, vector<8x128xf32> -> vector<8x128xf32>
    %c0_45 = arith.constant 0 : index
    %c0_46 = arith.constant 0 : index
    %c0_47 = arith.constant 0 : index
    %111 = vector.load %arg11[%c0_45, %c0_46, %c0_47] : memref<1x1x128xf32, #tpu.memory_space<vmem>>, vector<1x1x128xf32>
    %112 = vector.shape_cast %111 : vector<1x1x128xf32> to vector<1x128xf32>
    %113 = vector.broadcast %112 : vector<1x128xf32> to vector<8x128xf32>
    %114 = arith.addf %110, %113 : vector<8x128xf32>
    %cst_48 = arith.constant 0.000000e+00 : f32
    %115 = vector.broadcast %cst_48 : f32 to vector<8x128xf32>
    %116 = arith.maximumf %114, %115 : vector<8x128xf32>
    %117 = arith.truncf %116 : vector<8x128xf32> to vector<8x128xbf16>
    %c0_49 = arith.constant 0 : index
    %c0_50 = arith.constant 0 : index
    %c0_51 = arith.constant 0 : index
    %118 = vector.load %arg12[%c0_49, %c0_50, %c0_51] : memref<1x128x32xbf16, #tpu.memory_space<vmem>>, vector<1x128x32xbf16>
    %119 = vector.shape_cast %118 : vector<1x128x32xbf16> to vector<128x32xbf16>
    %cst_52 = arith.constant dense<0.000000e+00> : vector<8x32xf32>
    %120 = tpu.matmul %117, %119, %cst_52 {dimension_numbers = #tpu.dot_dimension_numbers<[1], [0], [0], [1], [0, 0, 1, 1], [], []>} : vector<8x128xbf16>, vector<128x32xbf16>, vector<8x32xf32> -> vector<8x32xf32>
    %c0_53 = arith.constant 0 : index
    %c0_54 = arith.constant 0 : index
    %c0_55 = arith.constant 0 : index
    %121 = vector.load %arg13[%c0_53, %c0_54, %c0_55] : memref<1x1x32xf32, #tpu.memory_space<vmem>>, vector<1x1x32xf32>
    %122 = vector.shape_cast %121 : vector<1x1x32xf32> to vector<1x32xf32>
    %123 = vector.broadcast %122 : vector<1x32xf32> to vector<8x32xf32>
    %124 = arith.addf %120, %123 : vector<8x32xf32>
    %125 = arith.addf %80, %124 : vector<8x32xf32>
    %126 = vector.shape_cast %125 : vector<8x32xf32> to vector<1x8x32xf32>
    %c0_56 = arith.constant 0 : index
    %c0_57 = arith.constant 0 : index
    %c0_58 = arith.constant 0 : index
    %127 = vector.load %arg15[%c0_56, %c0_57, %c0_58] : memref<1x8x32xf32, #tpu.memory_space<vmem>>, vector<1x8x32xf32>
    tpu.vector_store %arg15[%c0_56, %c0_57, %c0_58], %126 {strides = array<i32>} : memref<1x8x32xf32, #tpu.memory_space<vmem>>, vector<1x8x32xf32>,
    %c1_i32 = arith.constant 1 : i32
    %128 = arith.cmpi eq, %arg1, %c1_i32 : i32
    %129 = arith.extui %128 : i1 to i32
    %c0_i32_59 = arith.constant 0 : i32
    %130 = arith.cmpi ne, %129, %c0_i32_59 : i32
    scf.if %130 {
      %c0_60 = arith.constant 0 : index
      %c0_61 = arith.constant 0 : index
      %c0_62 = arith.constant 0 : index
      %131 = vector.load %arg15[%c0_60, %c0_61, %c0_62] : memref<1x8x32xf32, #tpu.memory_space<vmem>>, vector<1x8x32xf32>
      %c0_63 = arith.constant 0 : index
      %c0_64 = arith.constant 0 : index
      %c0_65 = arith.constant 0 : index
      %132 = vector.load %arg14[%c0_63, %c0_64, %c0_65] : memref<1x8x32xf32, #tpu.memory_space<vmem>>, vector<1x8x32xf32>
      tpu.vector_store %arg14[%c0_63, %c0_64, %c0_65], %131 {strides = array<i32>} : memref<1x8x32xf32, #tpu.memory_space<vmem>>, vector<1x8x32xf32>,
    } else {
    }
    return
  }
  func.func @transform_0(%arg0: i32, %arg1: i32) -> (i32, i32, i32) {
    %c0_i32 = arith.constant 0 : i32
    %c0_i32_0 = arith.constant 0 : i32
    %c0_i32_1 = arith.constant 0 : i32
    return %arg0, %c0_i32, %c0_i32_0 : i32, i32, i32
  }
  func.func @transform_1(%arg0: i32, %arg1: i32) -> (i32, i32, i32) {
    %c0_i32 = arith.constant 0 : i32
    %c0_i32_0 = arith.constant 0 : i32
    %c0_i32_1 = arith.constant 0 : i32
    return %arg1, %c0_i32, %c0_i32_0 : i32, i32, i32
  }
  func.func @transform_2(%arg0: i32, %arg1: i32) -> (i32, i32, i32) {
    %c0_i32 = arith.constant 0 : i32
    %c0_i32_0 = arith.constant 0 : i32
    %c0_i32_1 = arith.constant 0 : i32
    return %arg1, %c0_i32, %c0_i32_0 : i32, i32, i32
  }
  func.func @transform_3(%arg0: i32, %arg1: i32) -> (i32, i32, i32) {
    %c0_i32 = arith.constant 0 : i32
    %c0_i32_0 = arith.constant 0 : i32
    %c0_i32_1 = arith.constant 0 : i32
    return %arg1, %c0_i32, %c0_i32_0 : i32, i32, i32
  }
  func.func @transform_4(%arg0: i32, %arg1: i32) -> (i32, i32, i32) {
    %c0_i32 = arith.constant 0 : i32
    %c0_i32_0 = arith.constant 0 : i32
    %c0_i32_1 = arith.constant 0 : i32
    return %arg1, %c0_i32, %c0_i32_0 : i32, i32, i32
  }
  func.func @transform_5(%arg0: i32, %arg1: i32) -> (i32, i32, i32) {
    %c0_i32 = arith.constant 0 : i32
    %c0_i32_0 = arith.constant 0 : i32
    %c0_i32_1 = arith.constant 0 : i32
    return %arg1, %c0_i32, %c0_i32_0 : i32, i32, i32
  }
  func.func @transform_6(%arg0: i32, %arg1: i32) -> (i32, i32, i32) {
    %c0_i32 = arith.constant 0 : i32
    %c0_i32_0 = arith.constant 0 : i32
    %c0_i32_1 = arith.constant 0 : i32
    return %arg1, %c0_i32, %c0_i32_0 : i32, i32, i32
  }
  func.func @transform_7(%arg0: i32, %arg1: i32) -> (i32, i32, i32) {
    %c0_i32 = arith.constant 0 : i32
    %c0_i32_0 = arith.constant 0 : i32
    %c0_i32_1 = arith.constant 0 : i32
    return %arg1, %c0_i32, %c0_i32_0 : i32, i32, i32
  }
  func.func @transform_8(%arg0: i32, %arg1: i32) -> (i32, i32, i32) {
    %c0_i32 = arith.constant 0 : i32
    %c0_i32_0 = arith.constant 0 : i32
    %c0_i32_1 = arith.constant 0 : i32
    return %arg1, %c0_i32, %c0_i32_0 : i32, i32, i32
  }
  func.func @transform_9(%arg0: i32, %arg1: i32) -> (i32, i32, i32) {
    %c0_i32 = arith.constant 0 : i32
    %c0_i32_0 = arith.constant 0 : i32
    %c0_i32_1 = arith.constant 0 : i32
    return %arg1, %c0_i32, %c0_i32_0 : i32, i32, i32
  }
  func.func @transform_10(%arg0: i32, %arg1: i32) -> (i32, i32, i32) {
    %c0_i32 = arith.constant 0 : i32
    %c0_i32_0 = arith.constant 0 : i32
    %c0_i32_1 = arith.constant 0 : i32
    return %arg1, %c0_i32, %c0_i32_0 : i32, i32, i32
  }
  func.func @transform_11(%arg0: i32, %arg1: i32) -> (i32, i32, i32) {
    %c0_i32 = arith.constant 0 : i32
    %c0_i32_0 = arith.constant 0 : i32
    %c0_i32_1 = arith.constant 0 : i32
    return %arg1, %c0_i32, %c0_i32_0 : i32, i32, i32
  }
  func.func @transform_12(%arg0: i32, %arg1: i32) -> (i32, i32, i32) {
    %c0_i32 = arith.constant 0 : i32
    %c0_i32_0 = arith.constant 0 : i32
    %c0_i32_1 = arith.constant 0 : i32
    return %arg0, %c0_i32, %c0_i32_0 : i32, i32, i32
  }
}

</mosaic_0001>

<bundles_post_ra>
// kernel: tpu_custom_call.1
= control target key start
LH: loop header
LB: loop body
LE: loop exit
PB: predicated region body
PF: predicated region fallthrough
CT: control target
= control target key end

     0   :  { %s3168_s0 = inlined_call_operand.vmem [shape: f32[2,8,32], index: 0, kind: input, shape index: {}]   ;;  %s3169_s1 = inlined_call_operand.vmem [shape: f32[2,1,32], index: 1, kind: input, shape index: {}]   ;;  %s3170_s2 = inlined_call_operand.vmem [shape: f32[2,1,32], index: 2, kind: input, shape index: {}]   ;;  %s3171_s3 = inlined_call_operand.vmem [shape: bf16[2,32,96], index: 3, kind: input, shape index: {}]   ;;  %s3172_s4 = inlined_call_operand.vmem [shape: bf16[2,32,32], index: 4, kind: input, shape index: {}]   ;;  %s3173_s5 = inlined_call_operand.vmem [shape: f32[2,1,32], index: 5, kind: input, shape index: {}]   ;;  %s3174_s6 = inlined_call_operand.vmem [shape: f32[2,1,32], index: 6, kind: input, shape index: {}]   ;;  %s3175_s7 = inlined_call_operand.vmem [shape: f32[2,1,32], index: 7, kind: input, shape index: {}]   ;;  %s3176_s8 = inlined_call_operand.vmem [shape: bf16[2,32,128], index: 8, kind: input, shape index: {}]   ;;  %s3177_s9 = inlined_call_operand.vmem [shape: f32[2,1,128], index: 9, kind: input, shape index: {}]   ;;  %s3178_s10 = inlined_call_operand.vmem [shape: bf16[2,128,32], index: 10, kind: input, shape index: {}]   ;;  %s3179_s11 = inlined_call_operand.vmem [shape: f32[2,1,32], index: 11, kind: input, shape index: {}]   ;;  %s3180_s12 = inlined_call_operand.hbm [shape: f32[2,8,32], index: 12, kind: output, shape index: {}]  }
   0x1   :  { %3196 = sst [smem:[#allocation19_spill]] %s3168_s0 }
   0x2   :  { %3197 = sst [smem:[#allocation20_spill]] %s3171_s3 }
   0x3   :  { %3198 = sst [smem:[#allocation21_spill]] %s3172_s4 }
   0x4   :  { %3199 = sst [smem:[#allocation22_spill]] %s3180_s12 }
   0x5   :  { %17 = vsyncpa [#allocation4], 0 }
   0x6   :  { %19 = vsyncpa [#allocation4 + $0x1], 0  ;;  %s2705_s21 = smov 0   ;;  %s2707_s22 = smov 0  }
   0x7   :  { %s2709_s23 = smov 0   ;;  %s2711_s24 = smov 0  }
   0x8   :  { %s2713_s25 = smov 0   ;;  %s2715_s26 = smov 0  }
   0x9   :  { %s2717_s27 = smov 0   ;;  %s2719_s28 = smov 0  }
   0xa LB: > { %3200 = sst [smem:[#allocation6_spill]] %s2597_s21  ;;  %s2223_s29 = sadd.s32 4294967295, %s2625_s28   ;;  %s2625_s28 = sphi %s2719_s28, %s25_s28   ;;  %s2621_s27 = sphi %s2717_s27, %s3238_s27   ;;  %s2617_s26 = sphi %s2715_s26, %s3237_s26   ;;  %s2613_s25 = sphi %s2713_s25, %s3236_s25   ;;  %s2609_s24 = sphi %s2711_s24, %s3235_s24   ;;  %s2605_s23 = sphi %s2709_s23, %s3234_s23   ;;  %s2601_s22 = sphi %s2707_s22, %s3233_s22   ;;  %s2597_s21 = sphi %s2705_s21, %s3232_s21  }
   0xb   : > { %3201 = sst [smem:[#allocation7_spill]] %s2601_s22  ;;  %s2224_s30 = sadd.s32 4294967294, %s2625_s28  }
   0xc   : > { %3202 = sst [smem:[#allocation8_spill]] %s2605_s23  ;;  %s34_s13 = sadd.s32 1, %s2617_s26 }
   0xd   : > { %3203 = sst [smem:[#allocation9_spill]] %s2609_s24  ;;  %p35_p0 = scmp.ge.s32.totalorder %s34_s13, 2 }
   0xe   : > { %3204 = sst [smem:[#allocation10_spill]] %s2613_s25  ;;  %s37_s14 = sadd.s32 1, %s2621_s27 }
   0xf   : > { %3205 = sst [smem:[#allocation11_spill]] %s2617_s26  ;;  %p366_p1 = scmp.ne.s32.totalorder %s2605_s23, %s2601_s22 }
  0x10   : > { %3206 = sst [smem:[#allocation12_spill]] %s2621_s27  ;;  %p367_p2 = scmp.eq.s32.totalorder %s2223_s29, 3 }
  0x11   : > { %3207 = sst [smem:[#allocation13_spill]] %s2625_s28  ;;  %s3240_s13 = smov (%p35_p0, %s34_s13), 0 }
  0x12   : > { %3208 = sst [smem:[#allocation14_spill]] %s3240_s13  ;;  %s3242_s14 = smov (!%p35_p0, %s37_s14), %s2621_s27 }
  0x13   : > { %p2754_p3 = por %p367_p2, %p366_p1  ;;  %p372_p4 = scmp.ne.s32.totalorder %s2601_s22, %s2597_s21 }
  0x14   : > { %p39_p5 = scmp.ge.s32.totalorder %s3242_s14, 2  ;;  %p373_p6 = scmp.eq.s32.totalorder %s2224_s30, 3 }
  0x15   : > { %s3209_s15 = scalar_select %p2754_p3, 1, 0 }
  0x16   : > { %p2227_p7 = scmp.ge.s32.totalorder %s2625_s28, 1  ;;  %p472_p8 = scmp.lt.s32.totalorder %s2625_s28, 5 }
  0x17   : > { %3210 = sst [smem:[#allocation15_spill]] %s3209_s15  ;;  %s3244_s14 = smov (%p39_p5, %s3242_s14), 0 }
  0x18   : > { %3211 = sst [smem:[#allocation16_spill]] %s3244_s14  ;;  %p2764_p9 = por %p373_p6, %p372_p4 }
  0x19   : > { %p473_p10 = pnand %p2227_p7, %p472_p8  ;;  %s353_s17 = ssub.s32 %s2621_s27, %s3244_s14 }
  0x1a   : > { %s3212_s16 = scalar_select %p2764_p9, 1, 0 }
  0x1b   : > { %s356_s18 = sadd.s32 1, %s2605_s23  ;;  %p354_p11 = scmp.eq.s32.totalorder %s353_s17, 0 }
  0x1c   : > { %3213 = sst [smem:[#allocation17_spill]] %s3212_s16  ;;  %476 = sbr.rel (%p473_p10) target bundleno = 2788 (0xae4), region = 68 }
  0x1d   : > { %s2772_s19 = scalar_select %p354_p11, %s2605_s23, %s356_s18  }
  0x1e   : > { %s3182_s20 = sand.u32 (!%p473_p10), 1, %s2601_s22   ;;  %p554_p12 = scmp.lt.s32.totalorder (!%p473_p10), %s2613_s25, 1 }
  0x1f   : > { %3214 = sst [smem:[#allocation18_spill]] %s2772_s19  ;;  %s2778_s29 = sshll.u32 (!%p473_p10), %s3182_s20, 3 }
  0x20   : > { %p558_p13 = scmp.lt.s32.totalorder (!%p473_p10), %s2609_s24, 1  ;;  %s3215_s0 = sld [smem:[#allocation19_spill]] (!%p473_p10) }
  0x21   : > { %s3216_s3 = sld [smem:[#allocation20_spill]] (!%p473_p10)  ;;  %s3217_s4 = sld [smem:[#allocation21_spill]] (!%p473_p10) }
  0x22   : > { %s553_s16 = scalar_lea.vmem (!%p473_p10), [#allocation3], %s2778_s29  ;;  %s3218_s19 = sld [smem:[#allocation9_spill]] (!%p473_p10) }
  0x23   : > { %s555_s30 = scalar_select %p554_p12, %s2613_s25, 1 }
  0x24   : > { %s2783_s13 = scalar_select %p558_p13, %s2609_s24, 1 }
  0x25   : > { %s2229_s17 = sshll.u32 %s555_s30, 3 }
  0x26   : > { %s557_s20 = scalar_lea.vmem %s3215_s0, %s2229_s17  ;;  %s2284_s28 = sshll.u32 %s2783_s13, 4 }
  0x27   : > { %s2800_s22 = scalar_lea.vmem %s3216_s3, %s2284_s28  ;;  %s2805_s24 = scalar_lea.vmem %s3217_s4, %s2284_s28 }
  0x28   : > { %s579_s23 = scalar_lea.vmem %s3174_s6, %s2783_s13  ;;  %s2822_s0 = scalar_lea.vmem %s3176_s8, %s2284_s28 }
  0x29   : > { %s590_s3 = scalar_lea.vmem %s3177_s9, %s2783_s13  ;;  %s2287_s4 = sshll.u32 %s2783_s13, 6 }
  0x2a   : > { %s2832_s26 = scalar_lea.vmem %s3178_s10, %s2287_s4  ;;  %s598_s21 = scalar_lea.vmem %s3179_s11, %s2783_s13 }
  0x2b   : > { %p2238_p0 = scmp.ne.s32.totalorder %s3218_s19, 0 }
  0x2c   : > { %v604_v0 = vld [vmem:[%s557_s20] sm:$0xff] (!%p2238_p0)  ;;  %vm605_vm0 = vcmask (!%p2238_p0), 261120  }
  0x2d   : > { %603 = sbr.rel (%p2238_p0) target bundleno = 52 (0x34), region = 72  ;;  %606 = vst.msk [vmem:[#allocation2] sm:$0xff] (!%p2238_p0), %vm605_vm0, %v604_v0 }
  0x34 PF: > { %v2840_v1 = vld [vmem:[#allocation2] sm:$0xff]  ;;  %vm610_vm1 = vcmask 261120   ;;  %v2627_v9 = vmov 0.0   ;;  %vm2628_vm2 = vmmov 0   ;;  %v2498_v10 = vld [vmem:[%s2800_s22 + $0x8] sm:$0xff]   ;;  %s3219_s19 = scalar_lea.vmem %s3169_s1, %s2783_s13  ;;  %s3220_s12 = scalar_lea.vmem %s3170_s2, %s2783_s13  ;;  %v700_v29 = vlaneseq }
  0x35   : > { %v611_v2 = vsel %vm610_vm1, %v2840_v1, 0.0  ;;  %v2497_v8 = vld [vmem:[%s2800_s22] sm:$0xff]   ;;  %2322 = vmatprep.subr.bf16.mxu0 %v2627_v9  ;;  %2326 = vmatprep.mubr.msk.bf16.mxu0 %vm2628_vm2, %v2627_v9  ;;  %s2629_s15 = smov 104   ;;  %s2630_s25 = smov 120   ;;  %v2633_v33 = vmov 1983009808  }
  0x36   : > { %612 = vadd.xlane.f32.xlu0 %v611_v2  ;;  %2323 = vmatpush3.bf16.msra.mxu0 %v2497_v8  ;;  %v2239_v15 = vld [vmem:[%s3219_s19] ss:$0 sm:$0xff]  ;;  %s2631_s30 = smov 112   ;;  %s2632_s14 = smov 96   ;;  %v2890_v30 = vshrl.u32 %v700_v29, 7  ;;  %v2892_v31 = vand.u32 127, %v700_v29  ;;  %v718_v34 = vunpack.c.l.s4 %v2633_v33 }
  0x37   : > { %2342 = vmatprep.subr.bf16.mxu1 %v2627_v9  ;;  %2324 = vmatprep.subr.bf16.mxu0 %v2627_v9  ;;  %v2240_v17 = vld [vmem:[%s3220_s12] ss:$0 sm:$0xff]  ;;  %v2634_v36 = vmov 1934713408   ;;  %vm1166_vm4 = vcmask 64512   ;;  %s2635_s17 = smov 64   ;;  %s3221_s19 = scalar_lea.vmem %s3173_s5, %s2783_s13 }
  0x38   : > { %2344 = vmatprep.mubr.msk.bf16.mxu1 %vm2628_vm2, %v2627_v9  ;;  %vm704_vm3 = vcmp.ge.s32.totalorder %v2890_v30, %v2892_v31  ;;  %v750_v37 = vunpack.c.l.s4 %v2634_v36  ;;  %v719_v38 = vunpack.c.0.s8 %v718_v34  ;;  %vm1408_vm5 = vcmask 1043456   ;;  %s2637_s27 = smov 8   ;;  %s2638_s18 = smov 24  }
  0x39   : > { %vm1739_vm6 = vcmask 130048   ;;  %vm1741_vm7 = vcmask 195584  }
  0x3a   : > { %2325 = vmatpush3.bf16.msra.mxu0 %v2498_v10  ;;  %v751_v40 = vunpack.c.0.s8 %v750_v37  ;;  %v2897_v41 = vsub.s32 %v719_v38, %v2890_v30 }
  0x3b   : > { %2330 = vmatprep.subr.bf16.mxu0 %v2627_v9 }
  0x3c   : > { %v2900_v47 = vsub.s32 %v751_v40, %v2890_v30 }
  0xc3   : > { %v613_v3 = vpop.xlane.xlu0 %612 }
  0xc4   : > { %v615_v4 = vmul.f32 0.03125, %v613_v3 }
  0xc6   : > { %v616_v5 = vsub.f32 %v2840_v1, %v615_v4 }
  0xc8   : > { %v617_v6 = vmul.f32 %v616_v5, %v616_v5 }
  0xca   : > { %v618_v7 = vsel %vm610_vm1, %v617_v6, 0.0 }
  0xcb   : > { %619 = vadd.xlane.f32.xlu0 %v618_v7 }
 0x158   : > { %v620_v11 = vpop.xlane.xlu0 %619 }
 0x159   : > { %v621_v12 = vmul.f32 0.03125, %v620_v11 }
 0x15b   : > { %v622_v13 = vadd.f32 1e-05, %v621_v12 }
 0x15d   : > { %2511 = vrsqrt.f32 %v622_v13 }
 0x167   : > { %v2512_v14 = vpop.eup %2511 }
 0x168   : > { %v624_v16 = vmul.f32 %v2512_v14, %v616_v5 }
 0x16a   : > { %v631_v18 = vmul.f32 %v2239_v15, %v624_v16 }
 0x16c   : > { %v638_v19 = vadd.f32 %v2240_v17, %v631_v18 }
 0x16e   : > { %v639_v20 = vpack.c.bf16 %v638_v19, %v638_v19 }
 0x170   : > { %2327 = vmatmul.mubr.msk.bf16.vlgmr.msra.gmra.mrb[0].mxu0 %vm610_vm1, %v639_v20 }
 0x171   : > { %2332 = vmatprep.mubr.msk.bf16.mxu0 %vm2628_vm2, %v2627_v9 }
 0x243   : > { %v2869_v21 = vpop.f32.mrb[0].mxu0 }
 0x244   : > { %860 = vrot.lane.b32.xlu0 %v2869_v21, %s2629_s15  ;;  %856 = vrot.lane.b32.xlu1 %v2869_v21, %s2630_s25  ;;  %v2328_v22 = vpop.f32.mrb[1].mxu0  ;;  %v2874_v24 = vmul.f32 0.17677669, %v2869_v21 }
 0x245   : > { %v696_v23 = vpop.f32.mrb[2].mxu0 }
 0x246   : > { %v2329_v25 = vpop.f32.mrb[3].mxu0 }
 0x248   : > { %858 = vrot.lane.b32.xlu1 %v2869_v21, %s2631_s30  ;;  %712 = vrot.lane.b32.xlu0 %v2874_v24, %s2629_s15  ;;  %s3222_s15 = scalar_lea.vmem %s3175_s7, %s2783_s13 }
 0x24c   : > { %862 = vrot.lane.b32.xlu1 %v2869_v21, %s2632_s14 }
 0x2b6   : > { %v2879_v26 = vpop.permute.xlu1 %856  ;;  %v2885_v28 = vpop.permute.xlu0 %860 }
 0x2b7   : > { %864 = vrot.lane.b32.xlu1 %v2879_v26, %s2632_s14 }
 0x2ba   : > { %v2882_v27 = vpop.permute.xlu1 %858  ;;  %v713_v57 = vpop.permute.xlu0 %712 }
 0x2bb   : > { %866 = vrot.lane.b32.xlu1 %v2882_v27, %s2632_s14 }
 0x2be   : > { %v863_v32 = vpop.permute.xlu1 %862 }
 0x2bf   : > { %868 = vrot.lane.b32.xlu1 %v2885_v28, %s2632_s14 }
 0x2c3   : > { %706 = vrot.lane.b32.xlu1 %v2874_v24, %s2630_s25 }
 0x2c7   : > { %709 = vrot.lane.b32.xlu1 %v2874_v24, %s2631_s30 }
 0x329   : > { %v865_v35 = vpop.permute.xlu1 %864 }
 0x32d   : > { %v867_v39 = vpop.permute.xlu1 %866 }
 0x32e   : > { %v874_v42 = vcombine.low %v863_v32, %v867_v39  ;;  %v875_v43 = vcombine.high %v863_v32, %v867_v39 }
 0x330   : > { %v882_v48 = vrot.slane %v874_v42, %v2897_v41  ;;  %v889_v49 = vrot.slane %v875_v43, %v2897_v41 }
 0x331   : > { %v869_v44 = vpop.permute.xlu1 %868 }
 0x332   : > { %v890_v45 = vcombine.low %v865_v35, %v869_v44  ;;  %v891_v46 = vcombine.high %v865_v35, %v869_v44 }
 0x334   : > { %v898_v50 = vrot.slane %v890_v45, %v2897_v41  ;;  %v905_v51 = vrot.slane %v891_v46, %v2897_v41 }
 0x335   : > { %v707_v52 = vpop.permute.xlu1 %706 }
 0x336   : > { %v906_v53 = vcombine.low %v882_v48, %v898_v50  ;;  %v907_v54 = vcombine.high %v882_v48, %v898_v50  ;;  %v922_v55 = vcombine.low %v889_v49, %v905_v51  ;;  %v923_v56 = vcombine.high %v889_v49, %v905_v51 }
 0x337   : > { %v731_v62 = vcombine.low %v707_v52, %v713_v57  ;;  %v732_v63 = vcombine.high %v707_v52, %v713_v57 }
 0x338   : > { %v914_v58 = vrot.slane %v906_v53, %v2900_v47  ;;  %v921_v59 = vrot.slane %v907_v54, %v2900_v47  ;;  %v930_v60 = vrot.slane %v922_v55, %v2900_v47  ;;  %v937_v61 = vrot.slane %v923_v56, %v2900_v47 }
 0x339   : > { %v710_v0 = vpop.permute.xlu1 %709  ;;  %v739_v13 = vrot.slane %v731_v62, %v2897_v41  ;;  %v746_v14 = vrot.slane %v732_v63, %v2897_v41 }
 0x33a   : > { %v942_v2 = vcombine.low %v914_v58, %v921_v59  ;;  %v2246_v3 = vcombine.high %v914_v58, %v921_v59  ;;  %v958_v4 = vcombine.low %v930_v60, %v937_v61  ;;  %v2247_v5 = vcombine.high %v930_v60, %v937_v61 }
 0x33b   : > { %v715_v6 = vcombine.low %v2874_v24, %v710_v0  ;;  %v716_v7 = vcombine.high %v2874_v24, %v710_v0 }
 0x33c   : > { %v949_v8 = vrot.slane %v942_v2, %v2897_v41  ;;  %v957_v10 = vrot.slane %v2246_v3, %v2897_v41  ;;  %v965_v11 = vrot.slane %v958_v4, %v2897_v41  ;;  %v973_v12 = vrot.slane %v2247_v5, %v2897_v41 }
 0x33d   : > { %v723_v15 = vrot.slane %v715_v6, %v2897_v41  ;;  %v730_v16 = vrot.slane %v716_v7, %v2897_v41 }
 0x33e   : > { %v974_v17 = vcombine.low %v949_v8, %v957_v10  ;;  %v990_v18 = vcombine.low %v965_v11, %v973_v12  ;;  %v975_v19 = vcombine.high %v949_v8, %v957_v10  ;;  %v991_v20 = vcombine.high %v965_v11, %v973_v12 }
 0x33f   : > { %v747_v22 = vcombine.low %v723_v15, %v739_v13  ;;  %v748_v23 = vcombine.high %v723_v15, %v739_v13  ;;  %v763_v24 = vcombine.low %v730_v16, %v746_v14  ;;  %v764_v25 = vcombine.high %v730_v16, %v746_v14 }
 0x340   : > { %v982_v29 = vrot.slane %v974_v17, %v2900_v47  ;;  %v998_v32 = vrot.slane %v990_v18, %v2900_v47  ;;  %v989_v33 = vrot.slane %v975_v19, %v2900_v47  ;;  %v1005_v34 = vrot.slane %v991_v20, %v2900_v47 }
 0x341   : > { %v755_v35 = vrot.slane %v747_v22, %v2900_v47  ;;  %v762_v36 = vrot.slane %v748_v23, %v2900_v47  ;;  %v771_v37 = vrot.slane %v763_v24, %v2900_v47  ;;  %v778_v38 = vrot.slane %v764_v25, %v2900_v47 }
 0x342   : > { %v1006_v39 = vcombine.low %v982_v29, %v998_v32  ;;  %v1008_v40 = vcombine.low %v989_v33, %v1005_v34  ;;  %v1007_v55 = vcombine.high %v982_v29, %v998_v32  ;;  %v1009_v7 = vcombine.high %v989_v33, %v1005_v34 }
 0x343   : > { %v783_v42 = vcombine.low %v755_v35, %v762_v36  ;;  %v2244_v43 = vcombine.high %v755_v35, %v762_v36  ;;  %v799_v44 = vcombine.low %v771_v37, %v778_v38  ;;  %v2245_v45 = vcombine.high %v771_v37, %v778_v38 }
 0x344   : > { %v1010_v46 = vpack.c.bf16 %v1006_v39, %v1006_v39  ;;  %v1012_v48 = vpack.c.bf16 %v1008_v40, %v1008_v40  ;;  %v1011_v2 = vpack.c.bf16 %v1007_v55, %v1007_v55  ;;  %v1013_v10 = vpack.c.bf16 %v1009_v7, %v1009_v7 }
 0x345   : > { %v790_v49 = vrot.slane %v783_v42, %v2897_v41  ;;  %v798_v50 = vrot.slane %v2244_v43, %v2897_v41  ;;  %v806_v51 = vrot.slane %v799_v44, %v2897_v41  ;;  %v814_v52 = vrot.slane %v2245_v45, %v2897_v41 }
 0x346   : > { %v1171_v53 = vsel %vm1166_vm4, %v1010_v46, 0  ;;  %v1263_v54 = vsel %vm1166_vm4, %v1012_v48, 0  ;;  %v1217_v6 = vsel %vm1166_vm4, %v1011_v2, 0  ;;  %v1309_v12 = vsel %vm1166_vm4, %v1013_v10, 0 }
 0x347   : > { %v815_v56 = vcombine.low %v790_v49, %v798_v50  ;;  %v831_v57 = vcombine.low %v806_v51, %v814_v52  ;;  %2331 = vmatpush3.bf16.xpose.msra.mxu0 %v1171_v53  ;;  %2343 = vmatpush3.bf16.xpose.msra.mxu1 %v1263_v54  ;;  %v816_v58 = vcombine.high %v790_v49, %v798_v50 }
 0x348   : > { %2336 = vmatprep.subr.bf16.mxu0 %v2627_v9  ;;  %v832_v59 = vcombine.high %v806_v51, %v814_v52  ;;  %2354 = vmatprep.subr.bf16.mxu1 %v2627_v9 }
 0x349   : > { %v823_v60 = vrot.slane %v815_v56, %v2900_v47  ;;  %v839_v61 = vrot.slane %v831_v57, %v2900_v47  ;;  %v830_v62 = vrot.slane %v816_v58, %v2900_v47 }
 0x34a   : > { %v846_v63 = vrot.slane %v832_v59, %v2900_v47 }
 0x34b   : > { %v847_v0 = vcombine.low %v823_v60, %v839_v61  ;;  %v848_v8 = vcombine.high %v823_v60, %v839_v61 }
 0x34c   : > { %v849_v3 = vcombine.low %v830_v62, %v846_v63  ;;  %v850_v13 = vcombine.high %v830_v62, %v846_v63 }
 0x34d   : > { %v851_v4 = vpack.c.bf16 %v847_v0, %v847_v0  ;;  %v852_v11 = vpack.c.bf16 %v848_v8, %v848_v8 }
 0x34e   : > { %v853_v5 = vpack.c.bf16 %v849_v3, %v849_v3  ;;  %v854_v14 = vpack.c.bf16 %v850_v13, %v850_v13 }
 0x34f   : > { %2333 = vmatmul.mubr.msk.bf16.vlgmr.msra.gmra.mrb[4].mxu0 %vm1166_vm4, %v851_v4 }
 0x350   : > { %2345 = vmatmul.mubr.msk.bf16.vlgmr.msra.gmra.mrb[0].mxu1 %vm1166_vm4, %v853_v5  ;;  %2337 = vmatpush3.bf16.xpose.msra.mxu0 %v1217_v6 }
 0x351   : > { %2338 = vmatprep.mubr.msk.bf16.mxu0 %vm2628_vm2, %v2627_v9  ;;  %2348 = vmatprep.subr.bf16.mxu0 %v2627_v9 }
 0x352   : > { %2356 = vmatprep.mubr.msk.bf16.mxu1 %vm2628_vm2, %v2627_v9 }
 0x357   : > { %2339 = vmatmul.mubr.msk.bf16.vlgmr.msra.gmra.mrb[8].mxu0 %vm1166_vm4, %v852_v11 }
 0x358   : > { %2349 = vmatpush3.bf16.xpose.msra.mxu0 %v1309_v12  ;;  %2350 = vmatprep.mubr.msk.bf16.mxu0 %vm2628_vm2, %v2627_v9 }
 0x359   : > { %2360 = vmatprep.subr.bf16.mxu0 %v2627_v9 }
 0x35f   : > { %2351 = vmatmul.mubr.msk.bf16.vlgmr.msra.gmra.mrb[12].mxu0 %vm1166_vm4, %v854_v14 }
 0x360   : > { %2362 = vmatprep.mubr.msk.bf16.mxu0 %vm2628_vm2, %v2627_v9 }
 0x422   : > { %v1207_v15 = vpop.f32.mrb[4].mxu0 }
 0x423   : > { %v1353_v16 = vsel %vm704_vm3, %v1207_v15, -1e+30  ;;  %v1299_v17 = vpop.f32.mrb[0].mxu1  ;;  %v2334_v18 = vpop.f32.mrb[5].mxu0 }
 0x424   : > { %v1355_v19 = vsel %vm704_vm3, %v1299_v17, -1e+30  ;;  %v2346_v20 = vpop.f32.mrb[1].mxu1  ;;  %v1210_v22 = vpop.f32.mrb[6].mxu0  ;;  %v1357_v23 = vsel %vm1166_vm4, %v1353_v16, -inf }
 0x425   : > { %v1302_v24 = vpop.f32.mrb[2].mxu1  ;;  %v1363_v25 = vsel %vm1166_vm4, %v1355_v19, -inf  ;;  %1358 = vmax.xlane.f32.xlu1 %v1357_v23  ;;  %v2335_v29 = vpop.f32.mrb[7].mxu0 }
 0x426   : > { %1364 = vmax.xlane.f32.xlu0 %v1363_v25  ;;  %v2347_v32 = vpop.f32.mrb[3].mxu1 }
 0x42a   : > { %v1253_v33 = vpop.f32.mrb[8].mxu0 }
 0x42b   : > { %v1354_v34 = vsel %vm704_vm3, %v1253_v33, -1e+30  ;;  %v2340_v35 = vpop.f32.mrb[9].mxu0 }
 0x42c   : > { %v1256_v36 = vpop.f32.mrb[10].mxu0  ;;  %v1360_v37 = vsel %vm1166_vm4, %v1354_v34, -inf }
 0x42d   : > { %1361 = vmax.xlane.f32.xlu0 %v1360_v37  ;;  %v2341_v38 = vpop.f32.mrb[11].mxu0 }
 0x432   : > { %v1345_v39 = vpop.f32.mrb[12].mxu0 }
 0x433   : > { %v1356_v40 = vsel %vm704_vm3, %v1345_v39, -1e+30  ;;  %v2352_v42 = vpop.f32.mrb[13].mxu0 }
 0x434   : > { %v1348_v43 = vpop.f32.mrb[14].mxu0  ;;  %v1366_v44 = vsel %vm1166_vm4, %v1356_v40, -inf }
 0x435   : > { %1367 = vmax.xlane.f32.xlu1 %v1366_v44  ;;  %v2353_v45 = vpop.f32.mrb[15].mxu0 }
 0x443   : > { %1014 = vrot.lane.b32.xlu0 %v2869_v21, %s2635_s17 }
 0x446   : > { %1016 = vrot.lane.b32.xlu1 %v2879_v26, %s2635_s17 }
 0x4b2   : > { %v1359_v46 = vpop.xlane.xlu1 %1358 }
 0x4b3   : > { %v1369_v48 = vsub.f32 %v1353_v16, %v1359_v46  ;;  %v1365_v50 = vpop.xlane.xlu0 %1364 }
 0x4b4   : > { %v1371_v57 = vsub.f32 %v1355_v19, %v1365_v50 }
 0x4b5   : > { %v1373_v49 = vmul.f32 1.442695, %v1369_v48 }
 0x4b6   : > { %v1377_v58 = vmul.f32 1.442695, %v1371_v57 }
 0x4b7   : > { %2513 = vpow2.f32 %v1373_v49 }
 0x4ba   : > { %v1362_v51 = vpop.xlane.xlu0 %1361 }
 0x4bb   : > { %v1370_v52 = vsub.f32 %v1354_v34, %v1362_v51 }
 0x4bd   : > { %v1375_v30 = vmul.f32 1.442695, %v1370_v52 }
 0x4bf   : > { %2515 = vpow2.f32 %v1375_v30 }
 0x4c1   : > { %v2974_v31 = vpop.eup %2513 }
 0x4c2   : > { %v1381_v53 = vsel %vm1166_vm4, %v2974_v31, 0.0  ;;  %v1368_v26 = vpop.xlane.xlu1 %1367 }
 0x4c3   : > { %1382 = vadd.xlane.f32.xlu0 %v1381_v53  ;;  %v1372_v55 = vsub.f32 %v1356_v40, %v1368_v26 }
 0x4c5   : > { %v1379_v56 = vmul.f32 1.442695, %v1372_v55 }
 0x4c6   : > { %v1017_v63 = vpop.permute.xlu1 %1016 }
 0x4c7   : > { %2517 = vpow2.f32 %v1379_v56 }
 0x4c8   : > { %2519 = vpow2.f32 %v1377_v58 }
 0x4c9   : > { %v2978_v54 = vpop.eup %2515 }
 0x4ca   : > { %v1384_v21 = vsel %vm1166_vm4, %v2978_v54, 0.0 }
 0x4cb   : > { %1385 = vadd.xlane.f32.xlu1 %v1384_v21 }
 0x4d1   : > { %v2984_v59 = vpop.eup %2517 }
 0x4d2   : > { %v1390_v60 = vsel %vm1166_vm4, %v2984_v59, 0.0  ;;  %v2988_v61 = vpop.eup %2519 }
 0x4d9   : > { %1020 = vrot.lane.b32.xlu0 %v2885_v28, %s2635_s17  ;;  %v1387_v28 = vsel %vm1166_vm4, %v2988_v61, 0.0 }
 0x4dc   : > { %1018 = vrot.lane.b32.xlu1 %v2882_v27, %s2635_s17  ;;  %v1015_v27 = vpop.permute.xlu0 %1014 }
 0x4f8   : > { %1391 = vadd.xlane.f32.xlu0 %v1390_v60 }
 0x500   : > { %1388 = vadd.xlane.f32.xlu1 %v1387_v28 }
 0x550   : > { %v1383_v62 = vpop.xlane.xlu0 %1382 }
 0x551   : > { %2521 = vrcp.f32 %v1383_v62 }
 0x554   : > { %v1021_v0 = vpop.permute.xlu0 %1020 }
 0x555   : > { %v1042_v3 = vcombine.low %v1017_v63, %v1021_v0  ;;  %v1043_v4 = vcombine.high %v1017_v63, %v1021_v0 }
 0x557   : > { %v1050_v8 = vrot.slane %v1042_v3, %v2897_v41  ;;  %v1057_v10 = vrot.slane %v1043_v4, %v2897_v41 }
 0x558   : > { %v1386_v2 = vpop.xlane.xlu1 %1385 }
 0x559   : > { %2523 = vrcp.f32 %v1386_v2 }
 0x55b   : > { %v2522_v39 = vpop.eup %2521 }
 0x55c   : > { %v1019_v5 = vpop.permute.xlu1 %1018  ;;  %v1397_v51 = vmul.f32 %v2522_v39, %v2974_v31 }
 0x55d   : > { %v1026_v6 = vcombine.low %v1015_v27, %v1019_v5  ;;  %v1027_v7 = vcombine.high %v1015_v27, %v1019_v5 }
 0x55e   : > { %v1401_v57 = vpack.c.bf16 %v1397_v51, %v1397_v51 }
 0x55f   : > { %v1034_v11 = vrot.slane %v1026_v6, %v2897_v41  ;;  %v1041_v12 = vrot.slane %v1027_v7, %v2897_v41 }
 0x561   : > { %v1058_v13 = vcombine.low %v1034_v11, %v1050_v8  ;;  %v1059_v14 = vcombine.high %v1034_v11, %v1050_v8  ;;  %v1074_v15 = vcombine.low %v1041_v12, %v1057_v10  ;;  %v1075_v16 = vcombine.high %v1041_v12, %v1057_v10 }
 0x563   : > { %v1066_v17 = vrot.slane %v1058_v13, %v2900_v47  ;;  %v1073_v18 = vrot.slane %v1059_v14, %v2900_v47  ;;  %v1082_v19 = vrot.slane %v1074_v15, %v2900_v47  ;;  %v1089_v20 = vrot.slane %v1075_v16, %v2900_v47  ;;  %v2524_v45 = vpop.eup %2523 }
 0x564   : > { %v1398_v52 = vmul.f32 %v2524_v45, %v2978_v54 }
 0x565   : > { %v1094_v22 = vcombine.low %v1066_v17, %v1073_v18  ;;  %v2248_v23 = vcombine.high %v1066_v17, %v1073_v18  ;;  %v1110_v24 = vcombine.low %v1082_v19, %v1089_v20  ;;  %v2249_v25 = vcombine.high %v1082_v19, %v1089_v20 }
 0x566   : > { %v1402_v58 = vpack.c.bf16 %v1398_v52, %v1398_v52 }
 0x567   : > { %v1101_v29 = vrot.slane %v1094_v22, %v2897_v41  ;;  %v1109_v32 = vrot.slane %v2248_v23, %v2897_v41  ;;  %v1117_v33 = vrot.slane %v1110_v24, %v2897_v41  ;;  %v1125_v34 = vrot.slane %v2249_v25, %v2897_v41 }
 0x569   : > { %v1126_v35 = vcombine.low %v1101_v29, %v1109_v32  ;;  %v1142_v36 = vcombine.low %v1117_v33, %v1125_v34  ;;  %v1127_v37 = vcombine.high %v1101_v29, %v1109_v32  ;;  %v1143_v38 = vcombine.high %v1117_v33, %v1125_v34 }
 0x56b   : > { %v1134_v40 = vrot.slane %v1126_v35, %v2900_v47  ;;  %v1150_v42 = vrot.slane %v1142_v36, %v2900_v47  ;;  %v1141_v43 = vrot.slane %v1127_v37, %v2900_v47  ;;  %v1157_v44 = vrot.slane %v1143_v38, %v2900_v47  ;;  %v2499_v37 = vld [vmem:[%s2805_s24] sm:$0xff]  }
 0x56d   : > { %v1158_v46 = vcombine.low %v1134_v40, %v1150_v42  ;;  %v1159_v48 = vcombine.high %v1134_v40, %v1150_v42  ;;  %v1160_v49 = vcombine.low %v1141_v43, %v1157_v44  ;;  %v1161_v50 = vcombine.high %v1141_v43, %v1157_v44 }
 0x56f   : > { %v1162_v30 = vpack.c.bf16 %v1158_v46, %v1158_v46  ;;  %v1163_v53 = vpack.c.bf16 %v1159_v48, %v1159_v48  ;;  %v1164_v55 = vpack.c.bf16 %v1160_v49, %v1160_v49  ;;  %v1165_v56 = vpack.c.bf16 %v1161_v50, %v1161_v50  ;;  %v2500_v48 = vld [vmem:[%s2805_s24 + $0x8] sm:$0xff]   ;;  %s2636_s24 = smov 16  }
 0x571   : > { %v1410_v21 = vsel %vm1408_vm5, %v1162_v30, 0  ;;  %v1456_v26 = vsel %vm1408_vm5, %v1163_v53, 0  ;;  %v1502_v31 = vsel %vm1408_vm5, %v1164_v55, 0  ;;  %v1548_v54 = vsel %vm1408_vm5, %v1165_v56, 0 }
 0x572   : > { %2355 = vmatpush3.bf16.msra.mxu1 %v1410_v21  ;;  %2361 = vmatpush3.bf16.msra.mxu0 %v1456_v26 }
 0x573   : > { %2366 = vmatprep.subr.bf16.mxu1 %v2627_v9  ;;  %2372 = vmatprep.subr.bf16.mxu0 %v2627_v9 }
 0x575   : > { %2357 = vmatmul.mubr.msk.bf16.vlgmr.msra.gmra.mrb[4].mxu1 %vm1166_vm4, %v1401_v57  ;;  %2363 = vmatmul.mubr.msk.bf16.vlgmr.msra.gmra.mrb[16].mxu0 %vm1166_vm4, %v1402_v58 }
 0x576   : > { %2367 = vmatpush3.bf16.msra.mxu1 %v1502_v31  ;;  %2373 = vmatpush3.bf16.msra.mxu0 %v1548_v54 }
 0x577   : > { %2374 = vmatprep.mubr.msk.bf16.mxu0 %vm2628_vm2, %v2627_v9  ;;  %2368 = vmatprep.mubr.msk.bf16.mxu1 %vm2628_vm2, %v2627_v9 }
 0x578   : > { %2378 = vmatprep.subr.bf16.mxu1 %v2627_v9  ;;  %2386 = vmatprep.subr.bf16.mxu0 %v2627_v9 }
 0x585   : > { %v1392_v60 = vpop.xlane.xlu0 %1391 }
 0x586   : > { %2525 = vrcp.f32 %v1392_v60 }
 0x58d   : > { %v1389_v28 = vpop.xlane.xlu1 %1388 }
 0x58e   : > { %2527 = vrcp.f32 %v1389_v28 }
 0x590   : > { %v2526_v27 = vpop.eup %2525 }
 0x591   : > { %v1400_v62 = vmul.f32 %v2526_v27, %v2984_v59 }
 0x593   : > { %v1404_v63 = vpack.c.bf16 %v1400_v62, %v1400_v62 }
 0x595   : > { %2375 = vmatmul.mubr.msk.bf16.vlgmr.msra.gmra.mrb[20].mxu0 %vm1166_vm4, %v1404_v63 }
 0x596   : > { %2390 = vmatprep.mubr.msk.bf16.mxu0 %vm2628_vm2, %v2627_v9 }
 0x598   : > { %v2528_v0 = vpop.eup %2527 }
 0x599   : > { %v1399_v2 = vmul.f32 %v2528_v0, %v2988_v61 }
 0x59b   : > { %v1403_v3 = vpack.c.bf16 %v1399_v2, %v1399_v2 }
 0x59d   : > { %2369 = vmatmul.mubr.msk.bf16.vlgmr.msra.gmra.mrb[8].mxu1 %vm1166_vm4, %v1403_v3  ;;  %v2260_v3 = vld [vmem:[%s3221_s19] ss:$0 sm:$0xff] }
 0x59e   : > { %2382 = vmatprep.mubr.msk.bf16.mxu1 %vm2628_vm2, %v2627_v9  ;;  %2379 = vmatpush3.bf16.msra.mxu1 %v2499_v37 }
 0x59f   : > { %2380 = vmatprep.subr.bf16.mxu1 %v2627_v9 }
 0x5a2   : > { %2381 = vmatpush3.bf16.msra.mxu1 %v2500_v48 }
 0x5a3   : > { %2394 = vmatprep.subr.bf16.mxu1 %v2627_v9 }
 0x648   : > { %v1446_v4 = vpop.f32.mrb[4].mxu1  ;;  %v1492_v5 = vpop.f32.mrb[16].mxu0 }
 0x649   : > { %v2358_v6 = vpop.f32.mrb[5].mxu1  ;;  %v2364_v7 = vpop.f32.mrb[17].mxu0 }
 0x64a   : > { %v1449_v59 = vpop.f32.mrb[6].mxu1  ;;  %v1495_v8 = vpop.f32.mrb[18].mxu0 }
 0x64b   : > { %v2359_v10 = vpop.f32.mrb[7].mxu1  ;;  %v2365_v11 = vpop.f32.mrb[19].mxu0 }
 0x668   : > { %v1584_v12 = vpop.f32.mrb[20].mxu0 }
 0x669   : > { %v1606_v13 = vcombine.low %v1492_v5, %v1584_v12  ;;  %v1607_v14 = vcombine.high %v1492_v5, %v1584_v12  ;;  %v2376_v15 = vpop.f32.mrb[21].mxu0 }
 0x66a   : > { %v1587_v16 = vpop.f32.mrb[22].mxu0 }
 0x66b   : > { %v2377_v61 = vpop.f32.mrb[23].mxu0  ;;  %v1614_v23 = vrot.slane %v1606_v13, %v2897_v41  ;;  %v1621_v24 = vrot.slane %v1607_v14, %v2897_v41  ;;  %v2501_v16 = vld [vmem:[%s2822_s0] sm:$0xff]  }
 0x66c   : > { %2387 = vmatpush3.bf16.msra.mxu0 %v2501_v16  ;;  %v2503_v61 = vld [vmem:[%s2832_s26] sm:$0xff]  }
 0x66d   : > { %2388 = vmatprep.subr.bf16.mxu0 %v2627_v9 }
 0x670   : > { %v1538_v17 = vpop.f32.mrb[8].mxu1 }
 0x671   : > { %v1590_v18 = vcombine.low %v1446_v4, %v1538_v17  ;;  %v1591_v19 = vcombine.high %v1446_v4, %v1538_v17  ;;  %v2370_v20 = vpop.f32.mrb[9].mxu1  ;;  %v2504_v17 = vld [vmem:[%s2832_s26 + $0x8] sm:$0xff]  }
 0x672   : > { %v1541_v22 = vpop.f32.mrb[10].mxu1  ;;  %v2507_v20 = vld [vmem:[%s2832_s26 + $0x20] sm:$0xff]  }
 0x673   : > { %v1598_v25 = vrot.slane %v1590_v18, %v2897_v41  ;;  %v1605_v29 = vrot.slane %v1591_v19, %v2897_v41  ;;  %v2371_v32 = vpop.f32.mrb[11].mxu1  ;;  %v2505_v18 = vld [vmem:[%s2832_s26 + $0x10] sm:$0xff]   ;;  %v2506_v19 = vld [vmem:[%s2832_s26 + $0x18] sm:$0xff]   ;;  %v2508_v22 = vld [vmem:[%s2832_s26 + $0x28] sm:$0xff]  }
 0x674   : > { %v2264_v32 = vld [vmem:[%s579_s23] ss:$0 sm:$0xff] }
 0x675   : > { %v1622_v33 = vcombine.low %v1598_v25, %v1614_v23  ;;  %v1623_v34 = vcombine.high %v1598_v25, %v1614_v23  ;;  %v1638_v35 = vcombine.low %v1605_v29, %v1621_v24  ;;  %v1639_v36 = vcombine.high %v1605_v29, %v1621_v24 }
 0x677   : > { %v1630_v38 = vrot.slane %v1622_v33, %v2900_v47  ;;  %v1637_v39 = vrot.slane %v1623_v34, %v2900_v47  ;;  %v1646_v40 = vrot.slane %v1638_v35, %v2900_v47  ;;  %v1653_v42 = vrot.slane %v1639_v36, %v2900_v47  ;;  %v2265_v34 = vld [vmem:[%s3222_s15] ss:$0 sm:$0xff] }
 0x679   : > { %v1658_v43 = vcombine.low %v1630_v38, %v1637_v39  ;;  %v2258_v44 = vcombine.high %v1630_v38, %v1637_v39  ;;  %v1674_v45 = vcombine.low %v1646_v40, %v1653_v42  ;;  %v2259_v46 = vcombine.high %v1646_v40, %v1653_v42  ;;  %v2509_v38 = vld [vmem:[%s2832_s26 + $0x30] sm:$0xff]   ;;  %v2510_v39 = vld [vmem:[%s2832_s26 + $0x38] sm:$0xff]   ;;  %v2266_v40 = vld [vmem:[%s590_s3] ss:$0 sm:$0xff]  ;;  %s3223_s3 = sld [smem:[#allocation9_spill]] }
 0x67b   : > { %v1665_v49 = vrot.slane %v1658_v43, %v2897_v41  ;;  %v1673_v50 = vrot.slane %v2258_v44, %v2897_v41  ;;  %v1681_v51 = vrot.slane %v1674_v45, %v2897_v41  ;;  %v1689_v52 = vrot.slane %v2259_v46, %v2897_v41 }
 0x67d   : > { %v1691_v30 = vcombine.high %v1665_v49, %v1673_v50  ;;  %v1707_v53 = vcombine.high %v1681_v51, %v1689_v52  ;;  %v1690_v21 = vcombine.low %v1665_v49, %v1673_v50  ;;  %v1706_v26 = vcombine.low %v1681_v51, %v1689_v52 }
 0x67f   : > { %v1705_v55 = vrot.slane %v1691_v30, %v2900_v47  ;;  %v1721_v56 = vrot.slane %v1707_v53, %v2900_v47  ;;  %v1698_v57 = vrot.slane %v1690_v21, %v2900_v47  ;;  %v1714_v58 = vrot.slane %v1706_v26, %v2900_v47  ;;  %p2279_p1 = scmp.ne.s32.totalorder %s3223_s3, 1 }
 0x681   : > { %v1724_v31 = vcombine.low %v1705_v55, %v1721_v56  ;;  %v1723_v54 = vcombine.high %v1698_v57, %v1714_v58  ;;  %v1725_v60 = vcombine.high %v1705_v55, %v1721_v56  ;;  %v1722_v28 = vcombine.low %v1698_v57, %v1714_v58 }
 0x683   : > { %1731 = vrot.lane.b32.xlu1 %v1724_v31, %s2636_s24  ;;  %1727 = vrot.lane.b32.xlu0 %v1723_v54, %s2637_s27 }
 0x687   : > { %1735 = vrot.lane.b32.xlu1 %v1725_v60, %s2638_s18 }
 0x6f5   : > { %v1732_v41 = vpop.permute.xlu1 %1731  ;;  %v1728_v27 = vpop.permute.xlu0 %1727 }
 0x6f6   : > { %v1738_v62 = vsel %vm1166_vm4, %v1722_v28, %v1728_v27 }
 0x6f7   : > { %v1740_v0 = vsel %vm1739_vm6, %v1738_v62, %v1732_v41 }
 0x6f9   : > { %v1736_v63 = vpop.permute.xlu1 %1735 }
 0x6fa   : > { %v1742_v47 = vsel %vm1741_vm7, %v1740_v0, %v1736_v63 }
 0x6fb   : > { %v1743_v2 = vpack.c.bf16 %v1742_v47, %v1742_v47 }
 0x6fd   : > { %2383 = vmatmul.mubr.msk.bf16.vlgmr.msra.gmra.mrb[12].mxu1 %vm610_vm1, %v1743_v2 }
 0x6fe   : > { %2410 = vmatprep.mubr.msk.bf16.mxu1 %vm2628_vm2, %v2627_v9  ;;  %2395 = vmatpush3.bf16.msra.mxu1 %v2503_v61 }
 0x6ff   : > { %2396 = vmatprep.subr.bf16.mxu1 %v2627_v9 }
 0x702   : > { %2397 = vmatpush3.bf16.msra.mxu1 %v2504_v17 }
 0x703   : > { %2398 = vmatprep.subr.bf16.mxu1 %v2627_v9 }
 0x706   : > { %2399 = vmatpush3.bf16.msra.mxu1 %v2505_v18 }
 0x707   : > { %2400 = vmatprep.subr.bf16.mxu1 %v2627_v9 }
 0x70a   : > { %2401 = vmatpush3.bf16.msra.mxu1 %v2506_v19 }
 0x70b   : > { %2402 = vmatprep.subr.bf16.mxu1 %v2627_v9 }
 0x70e   : > { %2403 = vmatpush3.bf16.msra.mxu1 %v2507_v20 }
 0x70f   : > { %2404 = vmatprep.subr.bf16.mxu1 %v2627_v9 }
 0x712   : > { %2405 = vmatpush3.bf16.msra.mxu1 %v2508_v22 }
 0x713   : > { %2406 = vmatprep.subr.bf16.mxu1 %v2627_v9 }
 0x716   : > { %2407 = vmatpush3.bf16.msra.mxu1 %v2509_v38 }
 0x717   : > { %2408 = vmatprep.subr.bf16.mxu1 %v2627_v9  ;;  %v2270_v9 = vld [vmem:[%s598_s21] ss:$0 sm:$0xff] }
 0x71a   : > { %2409 = vmatpush3.bf16.msra.mxu1 %v2510_v39 }
 0x7d0   : > { %v1804_v4 = vpop.f32.mrb[12].mxu1 }
 0x7d1   : > { %v1805_v5 = vadd.f32 %v2260_v3, %v1804_v4  ;;  %v2384_v6 = vpop.f32.mrb[13].mxu1 }
 0x7d2   : > { %v1807_v7 = vpop.f32.mrb[14].mxu1 }
 0x7d3   : > { %v3062_v59 = vadd.f32 %v1805_v5, %v2840_v1  ;;  %v2385_v8 = vpop.f32.mrb[15].mxu1  ;;  %v2502_v1 = vld [vmem:[%s2822_s0 + $0x8] sm:$0xff]  }
 0x7d4   : > { %2389 = vmatpush3.bf16.msra.mxu0 %v2502_v1 }
 0x7d5   : > { %v1813_v10 = vsel %vm610_vm1, %v3062_v59, 0.0 }
 0x7d6   : > { %1814 = vadd.xlane.f32.xlu0 %v1813_v10 }
 0x863   : > { %v1815_v11 = vpop.xlane.xlu0 %1814 }
 0x864   : > { %v1816_v12 = vmul.f32 0.03125, %v1815_v11 }
 0x866   : > { %v1817_v13 = vsub.f32 %v3062_v59, %v1816_v12 }
 0x868   : > { %v1818_v14 = vmul.f32 %v1817_v13, %v1817_v13 }
 0x86a   : > { %v1819_v15 = vsel %vm610_vm1, %v1818_v14, 0.0 }
 0x86b   : > { %1820 = vadd.xlane.f32.xlu1 %v1819_v15 }
 0x8f8   : > { %v1821_v23 = vpop.xlane.xlu1 %1820 }
 0x8f9   : > { %v1822_v24 = vmul.f32 0.03125, %v1821_v23 }
 0x8fb   : > { %v1823_v25 = vadd.f32 1e-05, %v1822_v24 }
 0x8fd   : > { %2529 = vrsqrt.f32 %v1823_v25 }
 0x907   : > { %v2530_v29 = vpop.eup %2529 }
 0x908   : > { %v1825_v33 = vmul.f32 %v2530_v29, %v1817_v13 }
 0x90a   : > { %v1832_v35 = vmul.f32 %v2264_v32, %v1825_v33 }
 0x90c   : > { %v1839_v36 = vadd.f32 %v2265_v34, %v1832_v35 }
 0x90e   : > { %v1840_v37 = vpack.c.bf16 %v1839_v36, %v1839_v36 }
 0x910   : > { %2391 = vmatmul.mubr.msk.bf16.vlgmr.msra.gmra.mrb[24].mxu0 %vm610_vm1, %v1840_v37 }
 0x9e3   : > { %v1901_v42 = vpop.f32.mrb[24].mxu0 }
 0x9e4   : > { %v1902_v43 = vadd.f32 %v2266_v40, %v1901_v42  ;;  %v2392_v44 = vpop.f32.mrb[25].mxu0 }
 0x9e5   : > { %v1904_v45 = vpop.f32.mrb[26].mxu0 }
 0x9e6   : > { %v1907_v46 = vmax.f32 %v1902_v43, 0.0  ;;  %v2393_v48 = vpop.f32.mrb[27].mxu0 }
 0x9e8   : > { %v1908_v49 = vpack.c.bf16 %v1907_v46, %v1907_v46 }
 0x9ea   : > { %2411 = vmatmul.mubr.bf16.vlgmr.msra.gmra.mrb[16].mxu1 %v1908_v49 }
 0xabc   : > { %2025 = sbr.rel (%p2279_p1) target bundleno = 2763 (0xacb), region = 76 }
 0xabd   : > { %v2014_v50 = vpop.f32.mrb[16].mxu1 }
 0xabe   : > { %v2015_v51 = vadd.f32 %v2270_v9, %v2014_v50  ;;  %v2412_v52 = vpop.f32.mrb[17].mxu1 }
 0xabf   : > { %v2017_v30 = vpop.f32.mrb[18].mxu1 }
 0xac0   : > { %v2020_v53 = vadd.f32 %v2015_v51, %v3062_v59  ;;  %v2413_v21 = vpop.f32.mrb[19].mxu1 }
 0xac2   : > { %2021 = vst.msk [vmem:[#allocation2] sm:$0xff] %vm610_vm1, %v2020_v53 }
 0xac9   : > { %v2026_v26 = vld [vmem:[#allocation2] sm:$0xff] }
 0xaca   : > { %2027 = vst.msk [vmem:[%s553_s16] sm:$0xff] %vm610_vm1, %v2026_v26 }
 0xacb PF: > { %s3224_s13 = sld [smem:[#allocation10_spill]]  ;;  %s3225_s26 = sld [smem:[#allocation7_spill]] }
 0xacc   : > { %s3227_s18 = sld [smem:[#allocation22_spill]]  ;;  %s2042_s28 = sshll.u32 %s553_s16, 4  ;;  %s2043_s28 = int_to_ptr.vmem [resolvable:$true] %s2042_s28 }
 0xacd   : > { %s2531_s22 = scalar_lea.vmem %s2043_s28, 128  ;;  %s2639_s20 = smov [#allocation3]  }
 0xace   : > { %p2532_p2 = scmp.ne.s32.totalorder %s2043_s28, %s2531_s22  ;;  %s2535_s12 = sshll.u32 %s2639_s20, 4  ;;  %s2536_s12 = int_to_ptr.vmem [resolvable:$false] %s2535_s12 }
 0xacf   : > { %s2537_s15 = scalar_lea.vmem %s2536_s12, 256  ;;  %p2538_p6 = scmp.lt.s32.totalorder %s2043_s28, %s2536_s12 }
 0xad0   : > { %p2533_p4 = pnand %p2532_p2, %p2754_p3  ;;  %p2539_p7 = scmp.lt.s32.totalorder %s2537_s15, %s2531_s22 }
 0xad1   : > { %s2281_s17 = sshll.u32 %s3224_s13, 7  ;;  %s3228_s19 = sand.u32 1, %s3225_s26  }
 0xad2   : > { %s3117_s4 = scalar_lea.hbm %s3227_s18, %s2281_s17  ;;  %s2029_s0 = scalar_lea.sflag [#allocation4], %s3228_s19 }
 0xad3   : > { %p2534_p5 = pneg %p2533_p4  ;;  %p2540_p8 = por %p2539_p7, %p2538_p6 }
 0xad5   : > { %p2541_p10 = pnand %p2540_p8, %p2534_p5 }
 0xad7   : > { %2544 = shalt.err (!%p2541_p10)
}
 0xad8   : > { %s2545_s29 = scalar_lea.hbm %s3117_s4, 128  ;;  %s2549_s23 = scalar_lea.hbm %s3227_s18, 256 }
 0xad9   : > { %p2546_p11 = scmp.ne.s32.totalorder %s3117_s4, %s2545_s29  ;;  %p2550_p0 = scmp.lt.u32.totalorder %s3117_s4, %s3227_s18 }
 0xada   : > { %p2551_p1 = scmp.lt.u32.totalorder %s2549_s23, %s2545_s29  ;;  %p2553_p4 = scmp.lt.u32.totalorder %s2545_s29, %s3117_s4 }
 0xadb   : > { %p2547_p12 = pnand %p2546_p11, %p2754_p3 }
 0xadc   : > { %p2552_p2 = por %p2551_p1, %p2550_p0 }
 0xadd   : > { %p2548_p13 = pneg %p2547_p12 }
 0xade   : > { %p2554_p5 = por %p2553_p4, %p2552_p2 }
 0xae0   : > { %p2555_p6 = pnand %p2554_p5, %p2548_p13 }
 0xae2   : > { %2558 = shalt.err (!%p2555_p6)
}
 0xae3   : > { %2414 = dma.vmem_to_hbm [thread:$0]  (%p2754_p3), %s2043_s28, 128, %s3117_s4, %s2029_s0  }
 0xae4 PF: > { %s3229_s3 = sld [smem:[#allocation13_spill]]  ;;  %s3230_s13 = sld [smem:[#allocation6_spill]] }
 0xaea   : > { %p2420_p7 = scmp.ge.s32.totalorder %s3229_s3, 2  ;;  %s2054_s17 = sand.u32 1, %s3230_s13  }
 0xaeb   : > { %s2055_s24 = scalar_lea.sflag [#allocation4], %s2054_s17 }
 0xaec   : > { %p2417_p8 = pnand %p2420_p7, %p2764_p9 }
 0xaee   : > { %2592 = dma.done.wait (!%p2417_p8), %s2055_s24, 128  }
 0xaef   : > { %2594 = vsyncadd (!%p2417_p8), %s2055_s24, 4294967168  ;;  %s25_s28 = sadd.s32 1, %s3229_s3   ;;  %s3232_s21 = sld [smem:[#allocation7_spill]] }
 0xaf0   : > { %p22_p10 = scmp.ge.s32.totalorder %s25_s28, 6   ;;  %s3233_s22 = sld [smem:[#allocation8_spill]] }
 0xaf1   : > { %s3234_s23 = sld [smem:[#allocation18_spill]]  ;;  %s3235_s24 = sld [smem:[#allocation11_spill]] }
 0xaf2   : > { %s3236_s25 = sld [smem:[#allocation12_spill]]  ;;  %s3237_s26 = sld [smem:[#allocation14_spill]] }
 0xaf3   : > { %s3238_s27 = sld [smem:[#allocation16_spill]]  ;;  %24 = sbr.rel (!%p22_p10) target bundleno = 10 (0xa), region = 144 }
 0xafa   :  { %2060 = vsyncpa [#allocation4], 1 }
 0xafb   :  { %2062 = vsyncpa [#allocation4 + $0x1], 1 }

</bundles_post_ra>
